<compile_context>
chip_gen: v5e
topology: v5e:2x2
jax: 0.10.0
libtpu: 0.0.40
codegen_flags: <defaults>
</compile_context>

<pallas_src>
import functools

import jax
import jax.numpy as jnp
from jax import lax
from jax.experimental import pallas as pl
from jax.experimental.pallas import tpu as pltpu

ALPHA = 0.8
GAMMA = 2

_LANES = 128
_CHUNK_ROWS = 512        # rows folded per inner-loop step: (512,128) f32 = 256 KiB
_MAX_TILE_ROWS = 4096    # rows per grid step: (4096,128) f32 = 2 MiB per input
_N_CORE_SPLITS = 2       # leading "parallel" grid axis (both TensorCores on v7x)


def _chunk_bce_fold(x, t, row0, *, masked, n_rows):
    """BCE of one (rows, 128) chunk, folded over rows -> (1, 128) f32."""
    x = x.astype(jnp.float32)
    t = t.astype(jnp.float32)
    # Faithful to PyTorch: sigmoid, then log, then clamp at -100.
    p = jax.nn.sigmoid(x)
    log_p = jnp.maximum(jnp.log(p), -100.0)
    log_1mp = jnp.maximum(jnp.log(1.0 - p), -100.0)
    bce = -(t * log_p + (1.0 - t) * log_1mp)
    if masked:
        # Select (not multiply): robust against NaN/Inf garbage in rows that
        # lie past the end of the array (partial trailing / overhang blocks).
        row = lax.broadcasted_iota(jnp.int32, bce.shape, 0)
        bce = jnp.where(row0 + row < n_rows, bce, 0.0)
    return jnp.sum(bce, axis=0, keepdims=True)


def _tile_bce_fold(x_ref, t_ref, g, *, masked, n_rows, tile_rows, chunk_rows,
                   n_chunks):
    """Fold the whole (tile_rows, 128) tile into a (1, 128) f32 partial sum."""
    if n_chunks == 1:
        return _chunk_bce_fold(x_ref[...], t_ref[...], g * tile_rows,
                               masked=masked, n_rows=n_rows)

    def body(c, carry):
        r0 = pl.multiple_of(c * chunk_rows, chunk_rows)
        return carry + _chunk_bce_fold(
            x_ref[pl.ds(r0, chunk_rows), :],
            t_ref[pl.ds(r0, chunk_rows), :],
            g * tile_rows + c * chunk_rows,
            masked=masked, n_rows=n_rows)

    return lax.fori_loop(0, n_chunks, body,
                         jnp.zeros((1, _LANES), jnp.float32), unroll=True)


def _bce_sum_kernel(x_ref, t_ref, o_ref, acc_ref, *, n_rows, n_tiles, tile_rows,
                    chunk_rows, n_chunks, tiles_per_split, total_blocks,
                    first_masked_block):
    c = pl.program_id(0)            # core-split index ("parallel" axis)
    k = pl.program_id(1)            # row-tile index within the split ("arbitrary")
    g = c * tiles_per_split + k     # global (unclamped) row-block index

    @pl.when(k == 0)
    def _():
        acc_ref[...] = jnp.zeros_like(acc_ref)

    fold = functools.partial(_tile_bce_fold, x_ref, t_ref, g,
                             n_rows=n_rows, tile_rows=tile_rows,
                             chunk_rows=chunk_rows, n_chunks=n_chunks)

    if first_masked_block >= total_blocks:
        # No partial or overhang blocks anywhere: never pay the mask.
        acc_ref[...] += fold(masked=False)
    elif first_masked_block <= 0:
        # Every block may contain invalid rows (single partial tile).
        acc_ref[...] += fold(masked=True)
    else:
        @pl.when(g < first_masked_block)
        def _():
            acc_ref[...] += fold(masked=False)

        @pl.when(g >= first_masked_block)
        def _():
            acc_ref[...] += fold(masked=True)

    @pl.when(k == pl.num_programs(1) - 1)
    def _():
        # Per-core partial BCE sum -> SMEM scalar output row `c`.
        o_ref[0, 0] = jnp.sum(acc_ref[...])


def _bce_sum_jax(xs, ts):
    """Plain-JAX BCE *sum* (same clamp semantics) for tiny / tail slices."""
    xs = xs.astype(jnp.float32)
    ts = ts.astype(jnp.float32)
    p = jax.nn.sigmoid(xs)
    log_p = jnp.maximum(jnp.log(p), -100.0)
    log_1mp = jnp.maximum(jnp.log(1.0 - p), -100.0)
    return jnp.sum(-(ts * log_p + (1.0 - ts) * log_1mp))


def focal_loss(inputs, targets, alpha=ALPHA, gamma=GAMMA):
    """Pallas TPU implementation of FocalLoss.forward. Returns a scalar f32.

    `targets` may be f32/bf16/f16/int8/bool; narrower dtypes reduce HBM read
    traffic proportionally (the kernel upcasts to f32 internally).
    """
    x = inputs.reshape(-1)
    t = targets.reshape(-1)
    total_n = x.shape[0]

    rem = total_n % _LANES
    aligned_n = total_n - rem
    n_rows = aligned_n // _LANES

    if n_rows == 0:
        # Fewer than 128 elements: not worth a kernel launch.
        bce_sum = _bce_sum_jax(x, t)
    else:
        # Ragged tail (< 128 elements) folded in with plain JAX on a tiny slice.
        tail_sum = _bce_sum_jax(x[aligned_n:], t[aligned_n:]) if rem else 0.0

        x2 = x[:aligned_n].reshape(n_rows, _LANES)
        t2 = t[:aligned_n].reshape(n_rows, _LANES)

        # ---- tiling -------------------------------------------------------
        if n_rows <= _CHUNK_ROWS:
            tile_rows = n_rows            # single full-extent block (always legal)
            chunk_rows = n_rows
        else:
            chunk_rows = _CHUNK_ROWS
            # Aim for >= _N_CORE_SPLITS row-tiles so the "parallel" axis can
            # occupy both TensorCores on v7x; tiles are multiples of the chunk
            # size and capped at _MAX_TILE_ROWS (2 MiB f32 per input per step).
            target = -(-n_rows // _N_CORE_SPLITS)                      # cdiv
            tile_rows = min(_MAX_TILE_ROWS,
                            -(-target // _CHUNK_ROWS) * _CHUNK_ROWS)   # round up
        n_chunks = tile_rows // chunk_rows
        n_tiles = pl.cdiv(n_rows, tile_rows)
        has_partial_rows = (n_rows % tile_rows) != 0

        # ---- split the row-tile range across TensorCores ------------------
        n_splits = _N_CORE_SPLITS if n_tiles >= _N_CORE_SPLITS else 1
        tiles_per_split = pl.cdiv(n_tiles, n_splits)
        total_blocks = n_splits * tiles_per_split          # >= n_tiles
        if has_partial_rows:
            first_masked_block = n_tiles - 1
        elif total_blocks > n_tiles:
            first_masked_block = n_tiles
        else:
            first_masked_block = total_blocks               # never mask

        def in_map(c, k):
            # Clamp so overhang blocks (g >= n_tiles) re-read the last block;
            # their contribution is fully masked out inside the kernel.
            return (jnp.minimum(c * tiles_per_split + k, n_tiles - 1), 0)

        kernel = functools.partial(
            _bce_sum_kernel,
            n_rows=n_rows, n_tiles=n_tiles, tile_rows=tile_rows,
            chunk_rows=chunk_rows, n_chunks=n_chunks,
            tiles_per_split=tiles_per_split, total_blocks=total_blocks,
            first_masked_block=first_masked_block)

        partial_sums = pl.pallas_call(
            kernel,
            out_shape=jax.ShapeDtypeStruct((n_splits, 1), jnp.float32),
            grid_spec=pltpu.PrefetchScalarGridSpec(
                num_scalar_prefetch=0,
                grid=(n_splits, tiles_per_split),
                in_specs=[
                    pl.BlockSpec((tile_rows, _LANES), in_map),
                    pl.BlockSpec((tile_rows, _LANES), in_map),
                ],
                out_specs=pl.BlockSpec((1, 1), lambda c, k: (c, 0),
                                       memory_space=pltpu.SMEM),
                scratch_shapes=[pltpu.VMEM((1, _LANES), jnp.float32)],
            ),
            compiler_params=pltpu.CompilerParams(
                dimension_semantics=("parallel", "arbitrary"),
                vmem_limit_bytes=32 * 1024 * 1024,
            ),
        )(x2, t2)

        bce_sum = jnp.sum(partial_sums) + tail_sum

    mean_bce = bce_sum / jnp.float32(total_n)
    bce_exp = jnp.exp(-mean_bce)
    # gamma defaults to the integer 2 -> lax.integer_pow (cheap, exact).
    return alpha * (1.0 - bce_exp) ** gamma * mean_bce


def _focal_loss_ref(inputs, targets, alpha=ALPHA, gamma=GAMMA):
    p = jax.nn.sigmoid(inputs.reshape(-1).astype(jnp.float32))
    t = targets.reshape(-1).astype(jnp.float32)
    log_p = jnp.maximum(jnp.log(p), -100.0)
    log_1mp = jnp.maximum(jnp.log(1.0 - p), -100.0)
    bce = jnp.mean(-(t * log_p + (1.0 - t) * log_1mp))
    return alpha * (1.0 - jnp.exp(-bce)) ** gamma * bce


if __name__ == "__main__":
    key = jax.random.PRNGKey(0)
    k1, k2 = jax.random.split(key)

    # Primary case: NCHW logits + binary mask targets (like the PyTorch module).
    x = jax.random.normal(k1, (2, 4, 16, 16), dtype=jnp.float32)
    t = jax.random.bernoulli(k2, 0.3, (2, 4, 16, 16)).astype(jnp.float32)
    out = jax.block_until_ready(focal_loss(x, t))
    ref = _focal_loss_ref(x, t)
    assert jnp.allclose(out, ref, rtol=1e-5, atol=1e-6), (out, ref)

    # bf16 targets (narrow-dtype path: less HBM read traffic, exact for 0/1 masks).
    out_bf16 = jax.block_until_ready(focal_loss(x, t.astype(jnp.bfloat16)))
    assert jnp.allclose(out_bf16, ref, rtol=1e-5, atol=1e-6), (out_bf16, ref)

    # Ragged size (not a multiple of 128): aligned prefix in-kernel + JAX tail.
    xr = jax.random.normal(k1, (2, 3, 11, 7), dtype=jnp.float32)
    tr = jax.random.bernoulli(k2, 0.4, (2, 3, 11, 7)).astype(jnp.float32)
    out_r = jax.block_until_ready(focal_loss(xr, tr))
    ref_r = _focal_loss_ref(xr, tr)
    assert jnp.allclose(out_r, ref_r, rtol=1e-5, atol=1e-6), (out_r, ref_r)

    # Tiny input (< 128 elements): pure-JAX fallback path.
    xt = jax.random.normal(k1, (3, 5), dtype=jnp.float32)
    tt = jax.random.bernoulli(k2, 0.5, (3, 5)).astype(jnp.float32)
    out_t = jax.block_until_ready(focal_loss(xt, tt))
    ref_t = _focal_loss_ref(xt, tt)
    assert jnp.allclose(out_t, ref_t, rtol=1e-5, atol=1e-6), (out_t, ref_t)

    # Larger case exercising the chunked inner loop, the 2-way core split and
    # the partial trailing row-block mask (n_rows = 5040).
    xl = jax.random.normal(k1, (8, 16, 63, 80), dtype=jnp.float32)
    tl = jax.random.bernoulli(k2, 0.3, (8, 16, 63, 80)).astype(jnp.float32)
    out_l = jax.block_until_ready(focal_loss(xl, tl))
    ref_l = _focal_loss_ref(xl, tl)
    assert jnp.allclose(out_l, ref_l, rtol=1e-4, atol=1e-6), (out_l, ref_l)

    print("KERNEL_OK")
</pallas_src>

<mosaic_0001>
module attributes {stable_mosaic.version = 11 : i64} {
  func.func @_bce_sum_kernel(%arg0: i32, %arg1: i32, %arg2: memref<16x128xf32, #tpu.memory_space<vmem>>, %arg3: memref<16x128xf32, #tpu.memory_space<vmem>>, %arg4: memref<1x1xf32, #tpu.memory_space<smem>>, %arg5: memref<1x128xf32, #tpu.memory_space<vmem>>) attributes {dimension_semantics = [#tpu.dimension_semantics<parallel>, #tpu.dimension_semantics<arbitrary>], iteration_bounds = array<i64: 1, 1>, scalar_prefetch = 0 : i64, scratch_operands = 1 : i64, tpu.core_type = #tpu.core_type<tc>, window_params = [{transform_indices = @transform_0, window_bounds = array<i64: 16, 128>}, {transform_indices = @transform_1, window_bounds = array<i64: 16, 128>}, {transform_indices = @transform_2, window_bounds = array<i64: 1, 1>}]} {
    %c0_i32 = arith.constant 0 : i32
    %0 = arith.cmpi eq, %arg1, %c0_i32 : i32
    %1 = arith.extui %0 : i1 to i32
    %c0_i32_0 = arith.constant 0 : i32
    %2 = arith.cmpi ne, %1, %c0_i32_0 : i32
    scf.if %2 {
      %cst_16 = arith.constant 0.000000e+00 : f32
      %33 = vector.broadcast %cst_16 : f32 to vector<1x128xf32>
      %c0_17 = arith.constant 0 : index
      %c0_18 = arith.constant 0 : index
      %34 = vector.load %arg5[%c0_17, %c0_18] : memref<1x128xf32, #tpu.memory_space<vmem>>, vector<1x128xf32>
      tpu.vector_store %arg5[%c0_17, %c0_18], %33 {strides = array<i32>} : memref<1x128xf32, #tpu.memory_space<vmem>>, vector<1x128xf32>,
    } else {
    }
    %c0 = arith.constant 0 : index
    %c0_1 = arith.constant 0 : index
    %3 = vector.load %arg5[%c0, %c0_1] : memref<1x128xf32, #tpu.memory_space<vmem>>, vector<1x128xf32>
    %c0_2 = arith.constant 0 : index
    %c0_3 = arith.constant 0 : index
    %4 = vector.load %arg2[%c0_2, %c0_3] : memref<16x128xf32, #tpu.memory_space<vmem>>, vector<16x128xf32>
    %c0_4 = arith.constant 0 : index
    %c0_5 = arith.constant 0 : index
    %5 = vector.load %arg3[%c0_4, %c0_5] : memref<16x128xf32, #tpu.memory_space<vmem>>, vector<16x128xf32>
    %6 = arith.negf %4 : vector<16x128xf32>
    %7 = math.exp %6 : vector<16x128xf32>
    %cst = arith.constant 1.000000e+00 : f32
    %8 = vector.broadcast %cst : f32 to vector<16x128xf32>
    %9 = arith.addf %8, %7 : vector<16x128xf32>
    %10 = arith.divf %8, %9 : vector<16x128xf32>
    %11 = math.log %10 : vector<16x128xf32>
    %cst_6 = arith.constant -1.000000e+02 : f32
    %12 = vector.broadcast %cst_6 : f32 to vector<16x128xf32>
    %13 = arith.maximumf %11, %12 : vector<16x128xf32>
    %cst_7 = arith.constant 1.000000e+00 : f32
    %14 = vector.broadcast %cst_7 : f32 to vector<16x128xf32>
    %15 = arith.subf %14, %10 : vector<16x128xf32>
    %16 = math.log %15 : vector<16x128xf32>
    %cst_8 = arith.constant -1.000000e+02 : f32
    %17 = vector.broadcast %cst_8 : f32 to vector<16x128xf32>
    %18 = arith.maximumf %16, %17 : vector<16x128xf32>
    %19 = arith.mulf %5, %13 : vector<16x128xf32>
    %cst_9 = arith.constant 1.000000e+00 : f32
    %20 = vector.broadcast %cst_9 : f32 to vector<16x128xf32>
    %21 = arith.subf %20, %5 : vector<16x128xf32>
    %22 = arith.mulf %21, %18 : vector<16x128xf32>
    %23 = arith.addf %19, %22 : vector<16x128xf32>
    %cst_10 = arith.constant 0.000000e+00 : f32
    %24 = vector.broadcast %cst_10 : f32 to vector<16x128xf32>
    %25 = arith.subf %24, %23 : vector<16x128xf32>
    %cst_11 = arith.constant dense<0.000000e+00> : vector<128xf32>
    %26 = vector.multi_reduction <add>, %25, %cst_11 [0] : vector<16x128xf32> to vector<128xf32>
    %27 = vector.shape_cast %26 : vector<128xf32> to vector<1x128xf32>
    %28 = arith.addf %3, %27 : vector<1x128xf32>
    %c0_12 = arith.constant 0 : index
    %c0_13 = arith.constant 0 : index
    %29 = vector.load %arg5[%c0_12, %c0_13] : memref<1x128xf32, #tpu.memory_space<vmem>>, vector<1x128xf32>
    tpu.vector_store %arg5[%c0_12, %c0_13], %28 {strides = array<i32>} : memref<1x128xf32, #tpu.memory_space<vmem>>, vector<1x128xf32>,
    %c0_i32_14 = arith.constant 0 : i32
    %30 = arith.cmpi eq, %arg1, %c0_i32_14 : i32
    %31 = arith.extui %30 : i1 to i32
    %c0_i32_15 = arith.constant 0 : i32
    %32 = arith.cmpi ne, %31, %c0_i32_15 : i32
    scf.if %32 {
      %c0_16 = arith.constant 0 : index
      %c0_17 = arith.constant 0 : index
      %33 = vector.load %arg5[%c0_16, %c0_17] : memref<1x128xf32, #tpu.memory_space<vmem>>, vector<1x128xf32>
      %34 = vector.shape_cast %33 : vector<1x128xf32> to vector<1x1x128xf32>
      %cst_18 = arith.constant dense<0.000000e+00> : vector<1xf32>
      %35 = vector.multi_reduction <add>, %34, %cst_18 [1, 2] : vector<1x1x128xf32> to vector<1xf32>
      %36 = vector.shape_cast %35 : vector<1xf32> to vector<1x1x1xf32>
      %37 = vector.extract %36[0, 0, 0] : f32 from vector<1x1x1xf32>
      %c0_19 = arith.constant 0 : index
      %c0_20 = arith.constant 0 : index
      %38 = memref.load %arg4[%c0_19, %c0_20] : memref<1x1xf32, #tpu.memory_space<smem>>
      memref.store %37, %arg4[%c0_19, %c0_20] : memref<1x1xf32, #tpu.memory_space<smem>>
    } else {
    }
    return
  }
  func.func @transform_0(%arg0: i32, %arg1: i32) -> (i32, i32) {
    %c1_i32 = arith.constant 1 : i32
    %0 = arith.muli %arg0, %c1_i32 : i32
    %1 = arith.addi %0, %arg1 : i32
    %c0_i32 = arith.constant 0 : i32
    %2 = arith.minsi %1, %c0_i32 : i32
    %c0_i32_0 = arith.constant 0 : i32
    %c0_i32_1 = arith.constant 0 : i32
    return %2, %c0_i32_0 : i32, i32
  }
  func.func @transform_1(%arg0: i32, %arg1: i32) -> (i32, i32) {
    %c1_i32 = arith.constant 1 : i32
    %0 = arith.muli %arg0, %c1_i32 : i32
    %1 = arith.addi %0, %arg1 : i32
    %c0_i32 = arith.constant 0 : i32
    %2 = arith.minsi %1, %c0_i32 : i32
    %c0_i32_0 = arith.constant 0 : i32
    %c0_i32_1 = arith.constant 0 : i32
    return %2, %c0_i32_0 : i32, i32
  }
  func.func @transform_2(%arg0: i32, %arg1: i32) -> (i32, i32) {
    %c0_i32 = arith.constant 0 : i32
    %c0_i32_0 = arith.constant 0 : i32
    return %arg0, %c0_i32 : i32, i32
  }
}

</mosaic_0001>

<bundles_post_ra>
// kernel: tpu_custom_call.1
= control target key start
LH: loop header
LB: loop body
LE: loop exit
PB: predicated region body
PF: predicated region fallthrough
CT: control target
= control target key end

     0   :  { %7 = vsyncpa [#allocation4], 0  ;;  %s305_s0 = inlined_call_operand.hbm [shape: f32[16,128], index: 0, kind: input, shape index: {}]   ;;  %s306_s1 = inlined_call_operand.hbm [shape: f32[16,128], index: 1, kind: input, shape index: {}]   ;;  %s307_s2 = inlined_call_operand.hbm [shape: f32[1,1], index: 2, kind: output, shape index: {}]  }
   0x1   :  { %8 = vsyncpa [#allocation7], 0 }
   0x2   :  { %9 = vsyncpa [#allocation5], 0  ;;  %s20_s11 = sshll.u32 %s305_s0, 4  ;;  %s275_s12 = smov [#allocation3]   ;;  %s21_s11 = int_to_ptr.hbm [resolvable:$true] %s20_s11 }
   0x3   :  { %s22_s13 = sshll.u32 %s275_s12, 4  ;;  %s39_s16 = sshll.u32 %s306_s1, 4  ;;  %s23_s13 = int_to_ptr.vmem [resolvable:$true] %s22_s13  ;;  %s40_s16 = int_to_ptr.hbm [resolvable:$true] %s39_s16 }
   0x4   :  { %s276_s17 = smov 128   ;;  %s277_s18 = smov 8  }
   0x5   :  { %28 = dma.hbm_to_vmem [thread:$0]  %s21_s11, 256, %s23_s13, [#allocation4], %s276_s17, %s276_s17, %s277_s18  }
   0x6   :  { %s278_s19 = smov [#allocation6]  }
   0x7   :  { %s41_s20 = sshll.u32 %s278_s19, 4  ;;  %s42_s20 = int_to_ptr.vmem [resolvable:$true] %s41_s20 }
   0x8   :  { %47 = dma.hbm_to_vmem [thread:$0]  %s40_s16, 256, %s42_s20, [#allocation7], %s276_s17, %s276_s17, %s277_s18  }
   0x9   :  { %269 = dma.done.wait [#allocation4], 256  }
   0xa   :  { %270 = vsyncadd [#allocation4], 4294967040 }
   0xb   :  { %271 = dma.done.wait [#allocation7], 256  }
   0xc   :  { %272 = vsyncadd [#allocation7], 4294967040  ;;  %v279_v0 = vmov 0.0   ;;  %v70_v1 = vld [vmem:[#allocation3] sm:$0xff]  ;;  %v71_v2 = vld [vmem:[#allocation3 + $0x8] sm:$0xff]  ;;  %vm149_vm8 = vcmask 1040384  }
   0xd   :  { %68 = vst [vmem:[#allocation2] sm:$0x1] %v279_v0  ;;  %v183_v3 = vmul.f32 -1.442695, %v70_v1  ;;  %v184_v4 = vmul.f32 -1.442695, %v71_v2 }
   0xe   :  { %v72_v32 = vld [vmem:[#allocation6] sm:$0xff]  ;;  %v73_v34 = vld [vmem:[#allocation6 + $0x8] sm:$0xff]  ;;  %s167_s21 = sshll.u32 %s307_s2, 4  ;;  %s280_s23 = smov [#allocation8]   ;;  %s168_s21 = int_to_ptr.hbm [resolvable:$true] %s167_s21 }
   0xf   :  { %193 = vpow2.f32 %v183_v3  ;;  %v128_v41 = vsub.f32 1.0, %v72_v32  ;;  %v129_v44 = vsub.f32 1.0, %v73_v34 }
  0x10   :  { %195 = vpow2.f32 %v184_v4 }
  0x14   :  { %v69_v61 = vld [vmem:[#allocation2] sm:$0x1] }
  0x15   :  { %v194_v5 = vpop.eup %193 }
  0x16   :  { %v196_v6 = vpop.eup %195  ;;  %v80_v7 = vadd.f32 1.0, %v194_v5 }
  0x17   :  { %v81_v8 = vadd.f32 1.0, %v196_v6 }
  0x18   :  { %197 = vrcp.f32 %v80_v7  ;;  %vm87_vm0 = vweird.f32 %v80_v7  ;;  %v93_v12 = vand.u32 2147483648, %v80_v7  ;;  %v91_v15 = vand.u32 2147483647, %v80_v7 }
  0x19   :  { %199 = vrcp.f32 %v81_v8  ;;  %v108_v16 = vand.u32 2147483648, %v81_v8  ;;  %vm102_vm2 = vweird.f32 %v81_v8  ;;  %v106_v18 = vand.u32 2147483647, %v81_v8 }
  0x1a   :  { %v94_v20 = vor.u32 1.1754944e-38, %v93_v12  ;;  %vm92_vm5 = vcmp.eq.f32.partialorder %v91_v15, 8.507059e+37 }
  0x1b   :  { %v109_v23 = vor.u32 1.1754944e-38, %v108_v16  ;;  %vm107_vm7 = vcmp.eq.f32.partialorder %v106_v18, 8.507059e+37 }
  0x1e   :  { %v198_v9 = vpop.eup %197 }
  0x1f   :  { %v200_v10 = vpop.eup %199  ;;  %v83_v11 = vmul.f32 %v198_v9, %v80_v7  ;;  %vm88_vm1 = vweird.f32 %v198_v9 }
  0x20   :  { %v98_v13 = vmul.f32 %v200_v10, %v81_v8  ;;  %vm103_vm3 = vweird.f32 %v200_v10  ;;  %vm89_vm4 = vmor %vm87_vm0, %vm88_vm1 }
  0x21   :  { %v84_v14 = vsub.f32 1.0, %v83_v11  ;;  %vm104_vm6 = vmor %vm102_vm2, %vm103_vm3 }
  0x22   :  { %v99_v17 = vsub.f32 1.0, %v98_v13 }
  0x23   :  { %v85_v19 = vmul.f32 %v198_v9, %v84_v14 }
  0x24   :  { %v100_v21 = vmul.f32 %v200_v10, %v99_v17 }
  0x25   :  { %v86_v22 = vadd.f32 %v198_v9, %v85_v19 }
  0x26   :  { %v101_v24 = vadd.f32 %v200_v10, %v100_v21 }
  0x27   :  { %v90_v25 = vsel %vm89_vm4, %v198_v9, %v86_v22 }
  0x28   :  { %v95_v26 = vsel %vm92_vm5, %v94_v20, %v90_v25  ;;  %v105_v27 = vsel %vm104_vm6, %v200_v10, %v101_v24 }
  0x29   :  { %v110_v28 = vsel %vm107_vm7, %v109_v23, %v105_v27  ;;  %201 = vlog2.f32 %v95_v26  ;;  %v118_v29 = vsub.f32 1.0, %v95_v26 }
  0x2a   :  { %203 = vlog2.f32 %v110_v28  ;;  %v119_v30 = vsub.f32 1.0, %v110_v28 }
  0x2b   :  { %205 = vlog2.f32 %v118_v29 }
  0x2c   :  { %207 = vlog2.f32 %v119_v30 }
  0x2f   :  { %v202_v31 = vpop.eup %201 }
  0x30   :  { %v204_v33 = vpop.eup %203  ;;  %v113_v35 = vmul.f32 0.6931472, %v202_v31 }
  0x31   :  { %v206_v36 = vpop.eup %205  ;;  %v115_v37 = vmul.f32 0.6931472, %v204_v33 }
  0x32   :  { %v208_v38 = vpop.eup %207  ;;  %v116_v39 = vmax.f32 %v113_v35, -100.0  ;;  %v121_v40 = vmul.f32 0.6931472, %v206_v36 }
  0x33   :  { %v117_v42 = vmax.f32 %v115_v37, -100.0  ;;  %v123_v43 = vmul.f32 0.6931472, %v208_v38 }
  0x34   :  { %v124_v45 = vmax.f32 %v121_v40, -100.0  ;;  %v126_v46 = vmul.f32 %v116_v39, %v72_v32 }
  0x35   :  { %v125_v47 = vmax.f32 %v123_v43, -100.0  ;;  %v127_v48 = vmul.f32 %v117_v42, %v73_v34 }
  0x36   :  { %v130_v49 = vmul.f32 %v128_v41, %v124_v45 }
  0x37   :  { %v131_v50 = vmul.f32 %v129_v44, %v125_v47 }
  0x38   :  { %v132_v51 = vadd.f32 %v130_v49, %v126_v46 }
  0x39   :  { %v133_v52 = vadd.f32 %v131_v50, %v127_v48 }
  0x3a   :  { %v134_v53 = vsub.f32 0.0, %v132_v51 }
  0x3b   :  { %v135_v54 = vsub.f32 0.0, %v133_v52 }
  0x3d   :  { %v136_v55 = vadd.f32 %v135_v54, %v134_v53 }
  0x3f   :  { %v137_v56 = vrot.slane %v136_v55, 4 }
  0x41   :  { %v138_v57 = vadd.f32 %v137_v56, %v136_v55 }
  0x43   :  { %v139_v58 = vrot.slane %v138_v57, 2 }
  0x45   :  { %v140_v59 = vadd.f32 %v139_v58, %v138_v57 }
  0x47   :  { %v141_v60 = vrot.slane %v140_v59, 1 }
  0x49   :  { %v142_v62 = vadd.f32 %v141_v60, %v140_v59 }
  0x4b   :  { %v143_v63 = vadd.f32 %v142_v62, %v69_v61 }
  0x4d   :  { %144 = vst [vmem:[#allocation2] sm:$0x1] %v143_v63 }
  0x54   :  { %v148_v0 = vld [vmem:[#allocation2] sm:$0x1] }
  0x55   :  { %v150_v1 = vsel %vm149_vm8, %v148_v0, 0.0 }
  0x56   :  { %151 = vadd.xlane.f32.xlu0 %v150_v1 }
  0xc9   :  { %v152_v2 = vpop.xlane.xlu0 %151 }
  0xca   :  { %v153_v3 = vrot.slane %v152_v2, 4 }
  0xcc   :  { %v154_v4 = vadd.f32 %v153_v3, %v152_v2 }
  0xce   :  { %v155_v5 = vrot.slane %v154_v4, 2 }
  0xd0   :  { %v156_v6 = vadd.f32 %v155_v5, %v154_v4 }
  0xd2   :  { %v157_v7 = vrot.slane %v156_v6, 1 }
  0xd4   :  { %v158_v8 = vadd.f32 %v157_v7, %v156_v6 }
  0xd6   :  { %185 = vpush %v158_v8 }
 0x107   :  { %s186_s22 = spop %185 }
 0x108   :  { %161 = sst [smem:[#allocation8]] %s186_s22 }
 0x109   :  { %170 = dma.smem_to_hbm %s280_s23, 16, %s168_s21, [#allocation5]  }
 0x10a   :  { %273 = dma.done.wait [#allocation5], 16  }
 0x10b   :  { %274 = vsyncadd [#allocation5], 4294967280 }
 0x10c   :  { %175 = sfence }
 0x10d   :  { %176 = vsyncpa [#allocation4], 1 }
 0x10e   :  { %177 = vsyncpa [#allocation7], 1 }
 0x10f   :  { %178 = vsyncpa [#allocation5], 1 }

</bundles_post_ra>
